<compile_context>
chip_gen: v7x
topology: tpu7x:2x2x1
jax: 0.10.0
libtpu: 0.0.40
codegen_flags: <defaults>
</compile_context>

<pallas_src>
import functools

import numpy as np
import jax
import jax.numpy as jnp
from jax.experimental import pallas as pl
from jax.experimental.pallas import tpu as pltpu


# --------------------------------------------------------------------------- utilities
def _device_vmem_bytes():
    """Physical per-core VMEM (v7x: 64 MiB, v5e/v6e: 128 MiB); conservative fallback."""
    try:
        return int(pltpu.get_tpu_info().vmem_capacity_bytes)
    except Exception:
        return 64 << 20


def _vmem_limit(need_bytes):
    cap = _device_vmem_bytes()
    return int(min(max(int(need_bytes) + (4 << 20), 32 << 20), cap))


def _const_spec(shape, index_map):
    """Grid-invariant block; single-buffer it when the installed jax supports it."""
    try:
        return pl.BlockSpec(shape, index_map, pipeline_mode=pl.Buffered(1))
    except (AttributeError, TypeError):
        return pl.BlockSpec(shape, index_map)


def _make_propagator(lamb0, dx, dy, z, ref_idx, Hp, Wp, band_limited):
    """(Band-limited) ASM propagator on the padded grid, fftshifted order: (C, Hp, Wp) c64."""
    lamb = jnp.asarray(lamb0, jnp.float32) / ref_idx
    dfx = 1.0 / (dx * Hp)
    dfy = 1.0 / (dy * Wp)
    fx = jnp.fft.fftshift(jnp.fft.fftfreq(Hp, d=dx)).astype(jnp.float32)[:, None]
    # NOTE: reference builds fy from the padded *height* -> relies on H == W.
    fy = jnp.fft.fftshift(jnp.fft.fftfreq(Hp, d=dy)).astype(jnp.float32)[None, :]
    arg = (1.0 / lamb)[:, None, None] ** 2 - (fx[None] ** 2 + fy[None] ** 2)
    # TODO(synk): torch reference yields NaN for evanescent freqs (arg < 0); zeroed here.
    kz = 2.0 * np.pi * jnp.sqrt(jnp.maximum(arg, 0.0))
    prop = jnp.where(arg >= 0.0, jnp.exp(1j * (kz * z)).astype(jnp.complex64), 0.0 + 0.0j)
    if band_limited:
        f_limit_x = ((2.0 * dfx * z) ** 2 + 1.0) ** (-0.5) / lamb
        f_limit_y = ((2.0 * dfy * z) ** 2 + 1.0) ** (-0.5) / lamb
        hx = jnp.abs(fx)[None] <= f_limit_x[:, None, None]
        hy = jnp.abs(fy)[None] <= f_limit_y[:, None, None]
        prop = prop * (hx & hy).astype(jnp.complex64)
    return prop


def _partial_dft(Hp, H, ph):
    """Row/column slices of the (symmetric) Hp-point DFT matrix (host numpy, float64)."""
    k = np.arange(Hp)
    ang = -2.0 * np.pi * np.outer(k, k) / Hp
    F_r, F_i = np.cos(ang), np.sin(ang)
    G_r = np.ascontiguousarray(F_r[ph:ph + H, :])     # (H, Hp)
    G_i = np.ascontiguousarray(F_i[ph:ph + H, :])
    GT_r = np.ascontiguousarray(F_r[:, ph:ph + H])    # (Hp, H)
    GT_i = np.ascontiguousarray(F_i[:, ph:ph + H])
    return G_r, G_i, GT_r, GT_i


def _block_diag(m, reps):
    a, b = m.shape
    out = np.zeros((reps * a, reps * b), dtype=m.dtype)
    for c in range(reps):
        out[c * a:(c + 1) * a, c * b:(c + 1) * b] = m
    return out


# --------------------------------------------------------------------------- kernels
def _asm_fused_kernel(xr_ref, xi_ref, gtr_ref, gti_ref, gbr_ref, gbi_ref,
                      gr_ref, gi_ref, hbr_ref, hbi_ref, pr_ref, pi_ref,
                      or_ref, oi_ref, *, cdtype):
    """Small-field path: all wavelengths in one step, channels packed along lanes.

    xr/xi   (H, C*W)     unpadded field, channels along lanes
    gtr/gti (Hp, H)      GT = F[:, ph:ph+H]
    gbr/gbi (C*W, C*Wp)  block-diag(G),  G = F[ph:ph+H, :]
    gr/gi   (H, Hp)      G
    hbr/hbi (C*Wp, C*W)  block-diag(GT)
    pr/pi   (Hp, C*Wp)   propagator (ifftshifted, * 1/(Hp*Wp)), channels along lanes
    """
    f32 = jnp.float32
    dot = lambda a, b: jnp.dot(a, b, preferred_element_type=f32)
    cast = lambda a: a.astype(cdtype)

    xr, xi = xr_ref[...], xi_ref[...]
    gtr, gti = gtr_ref[...], gti_ref[...]
    # stage 1: T1 = GT @ X                          (Hp, C*W)
    m1, m2 = dot(gtr, xr), dot(gti, xi)
    m3 = dot(gtr + gti, xr + xi)
    t1r, t1i = m1 - m2, m3 - m1 - m2
    # stage 2: Y = T1 @ blockdiag(G)                (Hp, C*Wp)
    gbr, gbi = gbr_ref[...], gbi_ref[...]
    m1, m2 = dot(cast(t1r), gbr), dot(cast(t1i), gbi)
    m3 = dot(cast(t1r + t1i), gbr + gbi)
    yr, yi = m1 - m2, m3 - m1 - m2
    # stage 3: Z = Y * P  (P carries ifftshift and the 1/(Hp*Wp) scale)
    pr = pr_ref[...].astype(f32)
    pi = pi_ref[...].astype(f32)
    zr = yr * pr - yi * pi
    zi = yr * pi + yi * pr
    # stage 4: T3 = conj(G) @ Z                     (H, C*Wp)
    gr, gi = gr_ref[...], gi_ref[...]
    m1, m2 = dot(gr, cast(zr)), dot(gi, cast(zi))
    m3 = dot(gr + gi, cast(zi - zr))
    t3r, t3i = m1 + m2, m3 + m1 - m2
    # stage 5: out = T3 @ conj(blockdiag(GT))       (H, C*W)
    hbr, hbi = hbr_ref[...], hbi_ref[...]
    m1, m2 = dot(cast(t3r), hbr), dot(cast(t3i), hbi)
    m3 = dot(cast(t3r + t3i), hbr - hbi)
    or_ref[...] = m1 + m2
    oi_ref[...] = m3 - m1 + m2


def _asm_tiled_kernel(xr_ref, xi_ref, gtr_ref, gti_ref, gr_ref, gi_ref,
                      grt_ref, git_ref, gtrt_ref, gtit_ref, pr_ref, pi_ref,
                      or_ref, oi_ref, t1r_s, t1i_s, t1s_s, *, cdtype):
    """Large-field path: one (wavelength c, Wp-tile j) grid step.

    xr/xi     (1, H, W)    field for wavelength c (resident across j)
    gtr/gti   (Hp, H)      GT (grid-invariant, stage 1)
    gr/gi     (H, Hp)      G  (grid-invariant, stage 4)
    grt/git   (H, tw)      G[:, tile j]   (stage 2)
    gtrt/gtit (tw, H)      GT[tile j, :]  (stage 5)
    pr/pi     (1, Hp, tw)  propagator tile for (c, j)
    or/oi     (1, H, W)    accumulated output (resident across j)
    t1*_s     (Hp, W)      VMEM scratch: T1 = GT @ X (and t1r+t1i), per wavelength
    """
    f32 = jnp.float32
    dot = lambda a, b: jnp.dot(a, b, preferred_element_type=f32)
    cast = lambda a: a.astype(cdtype)
    j = pl.program_id(1)

    @pl.when(j == 0)
    def _():
        xr, xi = xr_ref[0], xi_ref[0]
        gtr, gti = gtr_ref[...], gti_ref[...]
        m1, m2 = dot(gtr, xr), dot(gti, xi)
        m3 = dot(gtr + gti, xr + xi)
        t1r, t1i = m1 - m2, m3 - m1 - m2
        t1r_s[...] = cast(t1r)
        t1i_s[...] = cast(t1i)
        t1s_s[...] = cast(t1r + t1i)
        or_ref[...] = jnp.zeros_like(or_ref)
        oi_ref[...] = jnp.zeros_like(oi_ref)

    # stage 2: Y[:, tile] = T1 @ G[:, tile]         (Hp, tw)
    grt, git = grt_ref[...], git_ref[...]
    m1, m2 = dot(t1r_s[...], grt), dot(t1i_s[...], git)
    m3 = dot(t1s_s[...], grt + git)
    yr, yi = m1 - m2, m3 - m1 - m2
    # stage 3: Z = Y * P[:, tile]
    pr = pr_ref[0].astype(f32)
    pi = pi_ref[0].astype(f32)
    zr = yr * pr - yi * pi
    zi = yr * pi + yi * pr
    # stage 4: T3[:, tile] = conj(G) @ Z            (H, tw)
    gr, gi = gr_ref[...], gi_ref[...]
    m1, m2 = dot(gr, cast(zr)), dot(gi, cast(zi))
    m3 = dot(gr + gi, cast(zi - zr))
    t3r, t3i = m1 + m2, m3 + m1 - m2
    # stage 5: out += T3[:, tile] @ conj(GT)[tile, :]
    gtrt, gtit = gtrt_ref[...], gtit_ref[...]
    m1, m2 = dot(cast(t3r), gtrt), dot(cast(t3i), gtit)
    m3 = dot(cast(t3r + t3i), gtrt - gtit)
    or_ref[0] += m1 + m2
    oi_ref[0] += m3 - m1 + m2


# --------------------------------------------------------------------------- wrappers
def _asm_fused_call(xr, xi, prop_r, prop_i, G_r, G_i, GT_r, GT_i,
                    C, H, W, Hp, Wp, cdtype, cbytes):
    CW, CWp = C * W, C * Wp
    # channels packed along the lane dimension
    xrp = jnp.transpose(xr, (1, 0, 2)).reshape(H, CW)
    xip = jnp.transpose(xi, (1, 0, 2)).reshape(H, CW)
    prp = jnp.transpose(prop_r, (1, 0, 2)).reshape(Hp, CWp)
    pip = jnp.transpose(prop_i, (1, 0, 2)).reshape(Hp, CWp)

    gtr = jnp.asarray(GT_r, dtype=cdtype)
    gti = jnp.asarray(GT_i, dtype=cdtype)
    gr = jnp.asarray(G_r, dtype=cdtype)
    gi = jnp.asarray(G_i, dtype=cdtype)
    gbr = jnp.asarray(_block_diag(G_r, C), dtype=cdtype)    # (CW, CWp)
    gbi = jnp.asarray(_block_diag(G_i, C), dtype=cdtype)
    hbr = jnp.asarray(_block_diag(GT_r, C), dtype=cdtype)   # (CWp, CW)
    hbi = jnp.asarray(_block_diag(GT_i, C), dtype=cdtype)

    vmem_need = (
        2 * H * CW * cbytes + 2 * H * CW * 4                      # field in / f32 out
        + 2 * Hp * CWp * cbytes                                    # propagator
        + 2 * (Hp * H + H * Hp + CW * CWp + CWp * CW) * cbytes     # DFT matrices
        + 10 * Hp * CWp * 4                                        # live f32 intermediates
    )

    full = lambda shape: pl.BlockSpec(shape, lambda i: (0, 0))
    const = lambda shape: _const_spec(shape, lambda i: (0, 0))

    out_r, out_i = pl.pallas_call(
        functools.partial(_asm_fused_kernel, cdtype=cdtype),
        out_shape=(jax.ShapeDtypeStruct((H, CW), jnp.float32),
                   jax.ShapeDtypeStruct((H, CW), jnp.float32)),
        grid_spec=pltpu.PrefetchScalarGridSpec(
            num_scalar_prefetch=0,
            grid=(1,),
            in_specs=[
                full((H, CW)), full((H, CW)),          # xr, xi
                const((Hp, H)), const((Hp, H)),        # GT
                const((CW, CWp)), const((CW, CWp)),    # blockdiag(G)
                const((H, Hp)), const((H, Hp)),        # G
                const((CWp, CW)), const((CWp, CW)),    # blockdiag(GT)
                full((Hp, CWp)), full((Hp, CWp)),      # propagator
            ],
            out_specs=[full((H, CW)), full((H, CW))],
        ),
        compiler_params=pltpu.CompilerParams(
            dimension_semantics=("arbitrary",),
            vmem_limit_bytes=_vmem_limit(vmem_need)),
    )(xrp, xip, gtr, gti, gbr, gbi, gr, gi, hbr, hbi, prp, pip)

    out_r = jnp.transpose(out_r.reshape(H, C, W), (1, 0, 2))
    out_i = jnp.transpose(out_i.reshape(H, C, W), (1, 0, 2))
    return out_r, out_i


def _asm_tiled_call(xr, xi, prop_r, prop_i, G_r, G_i, GT_r, GT_i,
                    C, H, W, Hp, Wp, cdtype, cbytes, tile_w):
    # choose the Wp tile width: full when small, otherwise a 128-multiple that divides Wp
    if tile_w is not None:
        tw = int(tile_w)
    elif Wp <= 256:
        tw = Wp
    elif Wp % 256 == 0:
        tw = 256
    elif Wp % 128 == 0:
        tw = 128
    else:
        tw = Wp
    assert Wp % tw == 0, "tile_w must divide the padded width"
    assert tw == Wp or tw % 128 == 0, "tile_w must be a multiple of 128 (or the full Wp)"
    nj = Wp // tw

    gtr = jnp.asarray(GT_r, dtype=cdtype)     # (Hp, H)
    gti = jnp.asarray(GT_i, dtype=cdtype)
    gr = jnp.asarray(G_r, dtype=cdtype)       # (H, Hp)
    gi = jnp.asarray(G_i, dtype=cdtype)

    vmem_need = (
        2 * 2 * H * W * cbytes + 2 * 2 * H * W * 4     # field (dbuf) + f32 output (dbuf)
        + 2 * 2 * Hp * tw * cbytes                      # propagator tiles (dbuf)
        + 4 * Hp * H * cbytes                           # grid-invariant DFT matrices
        + 2 * 2 * (H * tw + tw * H) * cbytes            # streamed G / GT tiles (dbuf)
        + 3 * Hp * W * cbytes                           # T1 scratch
        + 12 * Hp * tw * 4                              # live f32 intermediates
    )

    const = lambda shape: _const_spec(shape, lambda c, j: (0, 0))

    out_r, out_i = pl.pallas_call(
        functools.partial(_asm_tiled_kernel, cdtype=cdtype),
        out_shape=(jax.ShapeDtypeStruct((C, H, W), jnp.float32),
                   jax.ShapeDtypeStruct((C, H, W), jnp.float32)),
        grid_spec=pltpu.PrefetchScalarGridSpec(
            num_scalar_prefetch=0,
            grid=(C, nj),                                          # Wp (reduction) axis last
            in_specs=[
                pl.BlockSpec((1, H, W), lambda c, j: (c, 0, 0)),   # xr
                pl.BlockSpec((1, H, W), lambda c, j: (c, 0, 0)),   # xi
                const((Hp, H)), const((Hp, H)),                    # GT (stage 1)
                const((H, Hp)), const((H, Hp)),                    # G  (stage 4)
                pl.BlockSpec((H, tw), lambda c, j: (0, j)),        # G[:, tile]
                pl.BlockSpec((H, tw), lambda c, j: (0, j)),
                pl.BlockSpec((tw, H), lambda c, j: (j, 0)),        # GT[tile, :]
                pl.BlockSpec((tw, H), lambda c, j: (j, 0)),
                pl.BlockSpec((1, Hp, tw), lambda c, j: (c, 0, j)),  # prop_r tile
                pl.BlockSpec((1, Hp, tw), lambda c, j: (c, 0, j)),  # prop_i tile
            ],
            out_specs=[
                pl.BlockSpec((1, H, W), lambda c, j: (c, 0, 0)),
                pl.BlockSpec((1, H, W), lambda c, j: (c, 0, 0)),
            ],
            scratch_shapes=[pltpu.VMEM((Hp, W), cdtype) for _ in range(3)],
        ),
        compiler_params=pltpu.CompilerParams(
            dimension_semantics=("parallel", "arbitrary"),
            vmem_limit_bytes=_vmem_limit(vmem_need)),
    )(xr, xi, gtr, gti, gr, gi, gr, gi, gtr, gti, prop_r, prop_i)

    return out_r, out_i


def asm_propagation(field_r, field_i, lamb0, dx, dy, z, ref_idx,
                    band_limited=True, mxu_dtype=jnp.bfloat16,
                    force_tiled=False, tile_w=None):
    """JAX/Pallas equivalent of ASMPropagation.forward.

    field_r / field_i : (B, C, H, W) float32 real/imag parts of the input field.
    Returns (out_r, out_i) with the same shape, float32.
    mxu_dtype=jnp.bfloat16 (default) uses bf16 MXU operands with f32 accumulation;
    pass jnp.float32 for f32-exact arithmetic.
    """
    B, C, H, W = field_r.shape
    assert B == 1, "reference module's shape assert implies batch == 1"
    assert H == W, "reference asm_propagator implicitly requires a square field"
    lamb0 = jnp.asarray(lamb0, jnp.float32)
    assert int(lamb0.shape[0]) == C, "lamb0 must have one wavelength per channel"

    Hp, Wp = 2 * H, 2 * W
    ph = H // 2

    cdtype = np.dtype(mxu_dtype)
    cbytes = cdtype.itemsize

    # propagator with ifftshift and the 1/(Hp*Wp) IFFT scale folded in, stored in the MXU dtype
    prop = _make_propagator(lamb0, dx, dy, z, ref_idx, Hp, Wp, band_limited)
    prop = jnp.fft.ifftshift(prop, axes=(-2, -1)) * (1.0 / float(Hp * Wp))
    prop_r = jnp.real(prop).astype(cdtype)         # (C, Hp, Wp)
    prop_i = jnp.imag(prop).astype(cdtype)

    G_r, G_i, GT_r, GT_i = _partial_dft(Hp, H, ph)

    xr = field_r[0].astype(cdtype)                 # (C, H, W)
    xi = field_i[0].astype(cdtype)

    use_fused = (not force_tiled) and (W < 128) and (C * Wp <= 1024) and (Hp <= 256)
    if use_fused:
        out_r, out_i = _asm_fused_call(xr, xi, prop_r, prop_i, G_r, G_i, GT_r, GT_i,
                                       C, H, W, Hp, Wp, cdtype, cbytes)
    else:
        out_r, out_i = _asm_tiled_call(xr, xi, prop_r, prop_i, G_r, G_i, GT_r, GT_i,
                                       C, H, W, Hp, Wp, cdtype, cbytes, tile_w)
    return out_r[None], out_i[None]


# --------------------------------------------------------------------------- self-test
def _fft_reference(field_r, field_i, lamb0, dx, dy, z, ref_idx, band_limited):
    """Pure-JAX FFT reference of the same forward pass (pad -> fft2 -> *prop -> ifft2 -> crop)."""
    B, C, H, W = field_r.shape
    Hp, Wp = 2 * H, 2 * W
    ph, pw = H // 2, W // 2
    prop = _make_propagator(lamb0, dx, dy, z, ref_idx, Hp, Wp, band_limited)
    prop = jnp.fft.ifftshift(prop, axes=(-2, -1))[None]
    xpad = jnp.pad(field_r + 1j * field_i,
                   ((0, 0), (0, 0), (ph, H - ph), (pw, W - pw)))
    ref = jnp.fft.ifftn(jnp.fft.fftn(xpad, axes=(-2, -1)) * prop, axes=(-2, -1))
    return ref[..., ph:ph + H, pw:pw + W]


def _rel_err(out_r, out_i, ref):
    err = jnp.maximum(jnp.max(jnp.abs(out_r - jnp.real(ref))),
                      jnp.max(jnp.abs(out_i - jnp.imag(ref))))
    scale = jnp.maximum(jnp.max(jnp.abs(ref)), 1e-6)
    return float(err / scale)


if __name__ == "__main__":
    key = jax.random.PRNGKey(0)
    k1, k2, k3, k4 = jax.random.split(key, 4)

    dx = dy = 8e-6        # pixel pitch [m]
    z = 1e-3              # propagation distance [m]
    ref_idx = 1.0
    band_limited = True

    # ---- small field: fused channels-in-lanes path (default: bf16 MXU operands) ----
    B, C, H, W = 1, 4, 16, 16      # batch must be 1 (module's shape assert)
    field_r = jax.random.normal(k1, (B, C, H, W), dtype=jnp.float32)
    field_i = jax.random.normal(k2, (B, C, H, W), dtype=jnp.float32)
    lamb0 = jnp.asarray([450e-9, 520e-9, 638e-9, 700e-9], dtype=jnp.float32)

    out_r, out_i = asm_propagation(field_r, field_i, lamb0, dx, dy, z, ref_idx,
                                   band_limited=band_limited)
    jax.block_until_ready((out_r, out_i))
    assert out_r.shape == (B, C, H, W) and out_i.shape == (B, C, H, W)
    ref = _fft_reference(field_r, field_i, lamb0, dx, dy, z, ref_idx, band_limited)
    e = _rel_err(out_r, out_i, ref)
    assert e < 3e-2, f"fused bf16 path mismatch vs FFT reference: rel err = {e}"

    # same path with f32 MXU operands: tight tolerance (exact-arithmetic check)
    out_r32, out_i32 = asm_propagation(field_r, field_i, lamb0, dx, dy, z, ref_idx,
                                       band_limited=band_limited, mxu_dtype=jnp.float32)
    jax.block_until_ready((out_r32, out_i32))
    e = _rel_err(out_r32, out_i32, ref)
    assert e < 2e-3, f"fused f32 path mismatch vs FFT reference: rel err = {e}"

    # ---- larger field: Wp-tiled accumulator path (forced; 2 tiles of 128) ----
    C2, H2, W2 = 2, 128, 128
    f2_r = jax.random.normal(k3, (1, C2, H2, W2), dtype=jnp.float32)
    f2_i = jax.random.normal(k4, (1, C2, H2, W2), dtype=jnp.float32)
    lamb2 = jnp.asarray([450e-9, 638e-9], dtype=jnp.float32)
    out2_r, out2_i = asm_propagation(f2_r, f2_i, lamb2, dx, dy, z, ref_idx,
                                     band_limited=band_limited, mxu_dtype=jnp.float32,
                                     force_tiled=True, tile_w=128)
    jax.block_until_ready((out2_r, out2_i))
    ref2 = _fft_reference(f2_r, f2_i, lamb2, dx, dy, z, ref_idx, band_limited)
    e = _rel_err(out2_r, out2_i, ref2)
    assert e < 5e-3, f"tiled f32 path mismatch vs FFT reference: rel err = {e}"

    print("KERNEL_OK")
</pallas_src>

<mosaic_0001>
module attributes {stable_mosaic.version = 11 : i64} {
  func.func @_asm_fused_kernel(%arg0: i32, %arg1: memref<16x64xbf16, #tpu.memory_space<vmem>>, %arg2: memref<16x64xbf16, #tpu.memory_space<vmem>>, %arg3: memref<32x16xbf16, #tpu.memory_space<vmem>>, %arg4: memref<32x16xbf16, #tpu.memory_space<vmem>>, %arg5: memref<64x128xbf16, #tpu.memory_space<vmem>>, %arg6: memref<64x128xbf16, #tpu.memory_space<vmem>>, %arg7: memref<16x32xbf16, #tpu.memory_space<vmem>>, %arg8: memref<16x32xbf16, #tpu.memory_space<vmem>>, %arg9: memref<128x64xbf16, #tpu.memory_space<vmem>>, %arg10: memref<128x64xbf16, #tpu.memory_space<vmem>>, %arg11: memref<32x128xbf16, #tpu.memory_space<vmem>>, %arg12: memref<32x128xbf16, #tpu.memory_space<vmem>>, %arg13: memref<16x64xf32, #tpu.memory_space<vmem>>, %arg14: memref<16x64xf32, #tpu.memory_space<vmem>>) attributes {dimension_semantics = [#tpu.dimension_semantics<arbitrary>], iteration_bounds = array<i64: 1>, scalar_prefetch = 0 : i64, scratch_operands = 0 : i64, tpu.core_type = #tpu.core_type<tc>, window_params = [{pipeline_mode = #tpu.pipeline_mode<synchronous>, transform_indices = @transform_0, window_bounds = array<i64: 16, 64>}, {pipeline_mode = #tpu.pipeline_mode<synchronous>, transform_indices = @transform_1, window_bounds = array<i64: 16, 64>}, {pipeline_mode = #tpu.pipeline_mode<synchronous>, transform_indices = @transform_2, window_bounds = array<i64: 32, 16>}, {pipeline_mode = #tpu.pipeline_mode<synchronous>, transform_indices = @transform_3, window_bounds = array<i64: 32, 16>}, {pipeline_mode = #tpu.pipeline_mode<synchronous>, transform_indices = @transform_4, window_bounds = array<i64: 64, 128>}, {pipeline_mode = #tpu.pipeline_mode<synchronous>, transform_indices = @transform_5, window_bounds = array<i64: 64, 128>}, {pipeline_mode = #tpu.pipeline_mode<synchronous>, transform_indices = @transform_6, window_bounds = array<i64: 16, 32>}, {pipeline_mode = #tpu.pipeline_mode<synchronous>, transform_indices = @transform_7, window_bounds = array<i64: 16, 32>}, {pipeline_mode = #tpu.pipeline_mode<synchronous>, transform_indices = @transform_8, window_bounds = array<i64: 128, 64>}, {pipeline_mode = #tpu.pipeline_mode<synchronous>, transform_indices = @transform_9, window_bounds = array<i64: 128, 64>}, {pipeline_mode = #tpu.pipeline_mode<synchronous>, transform_indices = @transform_10, window_bounds = array<i64: 32, 128>}, {pipeline_mode = #tpu.pipeline_mode<synchronous>, transform_indices = @transform_11, window_bounds = array<i64: 32, 128>}, {pipeline_mode = #tpu.pipeline_mode<synchronous>, transform_indices = @transform_12, window_bounds = array<i64: 16, 64>}, {pipeline_mode = #tpu.pipeline_mode<synchronous>, transform_indices = @transform_13, window_bounds = array<i64: 16, 64>}]} {
    %c0 = arith.constant 0 : index
    %c0_0 = arith.constant 0 : index
    %0 = vector.load %arg1[%c0, %c0_0] : memref<16x64xbf16, #tpu.memory_space<vmem>>, vector<16x64xbf16>
    %c0_1 = arith.constant 0 : index
    %c0_2 = arith.constant 0 : index
    %1 = vector.load %arg2[%c0_1, %c0_2] : memref<16x64xbf16, #tpu.memory_space<vmem>>, vector<16x64xbf16>
    %c0_3 = arith.constant 0 : index
    %c0_4 = arith.constant 0 : index
    %2 = vector.load %arg3[%c0_3, %c0_4] : memref<32x16xbf16, #tpu.memory_space<vmem>>, vector<32x16xbf16>
    %c0_5 = arith.constant 0 : index
    %c0_6 = arith.constant 0 : index
    %3 = vector.load %arg4[%c0_5, %c0_6] : memref<32x16xbf16, #tpu.memory_space<vmem>>, vector<32x16xbf16>
    %cst = arith.constant dense<0.000000e+00> : vector<32x64xf32>
    %4 = tpu.matmul %2, %0, %cst {dimension_numbers = #tpu.dot_dimension_numbers<[1], [0], [0], [1], [0, 0, 1, 1], [], []>} : vector<32x16xbf16>, vector<16x64xbf16>, vector<32x64xf32> -> vector<32x64xf32>
    %cst_7 = arith.constant dense<0.000000e+00> : vector<32x64xf32>
    %5 = tpu.matmul %3, %1, %cst_7 {dimension_numbers = #tpu.dot_dimension_numbers<[1], [0], [0], [1], [0, 0, 1, 1], [], []>} : vector<32x16xbf16>, vector<16x64xbf16>, vector<32x64xf32> -> vector<32x64xf32>
    %6 = arith.addf %2, %3 : vector<32x16xbf16>
    %7 = arith.addf %0, %1 : vector<16x64xbf16>
    %cst_8 = arith.constant dense<0.000000e+00> : vector<32x64xf32>
    %8 = tpu.matmul %6, %7, %cst_8 {dimension_numbers = #tpu.dot_dimension_numbers<[1], [0], [0], [1], [0, 0, 1, 1], [], []>} : vector<32x16xbf16>, vector<16x64xbf16>, vector<32x64xf32> -> vector<32x64xf32>
    %9 = arith.subf %4, %5 : vector<32x64xf32>
    %10 = arith.subf %8, %4 : vector<32x64xf32>
    %11 = arith.subf %10, %5 : vector<32x64xf32>
    %c0_9 = arith.constant 0 : index
    %c0_10 = arith.constant 0 : index
    %12 = vector.load %arg5[%c0_9, %c0_10] : memref<64x128xbf16, #tpu.memory_space<vmem>>, vector<64x128xbf16>
    %c0_11 = arith.constant 0 : index
    %c0_12 = arith.constant 0 : index
    %13 = vector.load %arg6[%c0_11, %c0_12] : memref<64x128xbf16, #tpu.memory_space<vmem>>, vector<64x128xbf16>
    %14 = arith.truncf %9 : vector<32x64xf32> to vector<32x64xbf16>
    %cst_13 = arith.constant dense<0.000000e+00> : vector<32x128xf32>
    %15 = tpu.matmul %14, %12, %cst_13 {dimension_numbers = #tpu.dot_dimension_numbers<[1], [0], [0], [1], [0, 0, 1, 1], [], []>} : vector<32x64xbf16>, vector<64x128xbf16>, vector<32x128xf32> -> vector<32x128xf32>
    %16 = arith.truncf %11 : vector<32x64xf32> to vector<32x64xbf16>
    %cst_14 = arith.constant dense<0.000000e+00> : vector<32x128xf32>
    %17 = tpu.matmul %16, %13, %cst_14 {dimension_numbers = #tpu.dot_dimension_numbers<[1], [0], [0], [1], [0, 0, 1, 1], [], []>} : vector<32x64xbf16>, vector<64x128xbf16>, vector<32x128xf32> -> vector<32x128xf32>
    %18 = arith.addf %9, %11 : vector<32x64xf32>
    %19 = arith.truncf %18 : vector<32x64xf32> to vector<32x64xbf16>
    %20 = arith.addf %12, %13 : vector<64x128xbf16>
    %cst_15 = arith.constant dense<0.000000e+00> : vector<32x128xf32>
    %21 = tpu.matmul %19, %20, %cst_15 {dimension_numbers = #tpu.dot_dimension_numbers<[1], [0], [0], [1], [0, 0, 1, 1], [], []>} : vector<32x64xbf16>, vector<64x128xbf16>, vector<32x128xf32> -> vector<32x128xf32>
    %22 = arith.subf %15, %17 : vector<32x128xf32>
    %23 = arith.subf %21, %15 : vector<32x128xf32>
    %24 = arith.subf %23, %17 : vector<32x128xf32>
    %c0_16 = arith.constant 0 : index
    %c0_17 = arith.constant 0 : index
    %25 = vector.load %arg11[%c0_16, %c0_17] : memref<32x128xbf16, #tpu.memory_space<vmem>>, vector<32x128xbf16>
    %26 = arith.extf %25 : vector<32x128xbf16> to vector<32x128xf32>
    %c0_18 = arith.constant 0 : index
    %c0_19 = arith.constant 0 : index
    %27 = vector.load %arg12[%c0_18, %c0_19] : memref<32x128xbf16, #tpu.memory_space<vmem>>, vector<32x128xbf16>
    %28 = arith.extf %27 : vector<32x128xbf16> to vector<32x128xf32>
    %29 = arith.mulf %22, %26 : vector<32x128xf32>
    %30 = arith.mulf %24, %28 : vector<32x128xf32>
    %31 = arith.subf %29, %30 : vector<32x128xf32>
    %32 = arith.mulf %22, %28 : vector<32x128xf32>
    %33 = arith.mulf %24, %26 : vector<32x128xf32>
    %34 = arith.addf %32, %33 : vector<32x128xf32>
    %c0_20 = arith.constant 0 : index
    %c0_21 = arith.constant 0 : index
    %35 = vector.load %arg7[%c0_20, %c0_21] : memref<16x32xbf16, #tpu.memory_space<vmem>>, vector<16x32xbf16>
    %c0_22 = arith.constant 0 : index
    %c0_23 = arith.constant 0 : index
    %36 = vector.load %arg8[%c0_22, %c0_23] : memref<16x32xbf16, #tpu.memory_space<vmem>>, vector<16x32xbf16>
    %37 = arith.truncf %31 : vector<32x128xf32> to vector<32x128xbf16>
    %cst_24 = arith.constant dense<0.000000e+00> : vector<16x128xf32>
    %38 = tpu.matmul %35, %37, %cst_24 {dimension_numbers = #tpu.dot_dimension_numbers<[1], [0], [0], [1], [0, 0, 1, 1], [], []>} : vector<16x32xbf16>, vector<32x128xbf16>, vector<16x128xf32> -> vector<16x128xf32>
    %39 = arith.truncf %34 : vector<32x128xf32> to vector<32x128xbf16>
    %cst_25 = arith.constant dense<0.000000e+00> : vector<16x128xf32>
    %40 = tpu.matmul %36, %39, %cst_25 {dimension_numbers = #tpu.dot_dimension_numbers<[1], [0], [0], [1], [0, 0, 1, 1], [], []>} : vector<16x32xbf16>, vector<32x128xbf16>, vector<16x128xf32> -> vector<16x128xf32>
    %41 = arith.addf %35, %36 : vector<16x32xbf16>
    %42 = arith.subf %34, %31 : vector<32x128xf32>
    %43 = arith.truncf %42 : vector<32x128xf32> to vector<32x128xbf16>
    %cst_26 = arith.constant dense<0.000000e+00> : vector<16x128xf32>
    %44 = tpu.matmul %41, %43, %cst_26 {dimension_numbers = #tpu.dot_dimension_numbers<[1], [0], [0], [1], [0, 0, 1, 1], [], []>} : vector<16x32xbf16>, vector<32x128xbf16>, vector<16x128xf32> -> vector<16x128xf32>
    %45 = arith.addf %38, %40 : vector<16x128xf32>
    %46 = arith.addf %44, %38 : vector<16x128xf32>
    %47 = arith.subf %46, %40 : vector<16x128xf32>
    %c0_27 = arith.constant 0 : index
    %c0_28 = arith.constant 0 : index
    %48 = vector.load %arg9[%c0_27, %c0_28] : memref<128x64xbf16, #tpu.memory_space<vmem>>, vector<128x64xbf16>
    %c0_29 = arith.constant 0 : index
    %c0_30 = arith.constant 0 : index
    %49 = vector.load %arg10[%c0_29, %c0_30] : memref<128x64xbf16, #tpu.memory_space<vmem>>, vector<128x64xbf16>
    %50 = arith.truncf %45 : vector<16x128xf32> to vector<16x128xbf16>
    %cst_31 = arith.constant dense<0.000000e+00> : vector<16x64xf32>
    %51 = tpu.matmul %50, %48, %cst_31 {dimension_numbers = #tpu.dot_dimension_numbers<[1], [0], [0], [1], [0, 0, 1, 1], [], []>} : vector<16x128xbf16>, vector<128x64xbf16>, vector<16x64xf32> -> vector<16x64xf32>
    %52 = arith.truncf %47 : vector<16x128xf32> to vector<16x128xbf16>
    %cst_32 = arith.constant dense<0.000000e+00> : vector<16x64xf32>
    %53 = tpu.matmul %52, %49, %cst_32 {dimension_numbers = #tpu.dot_dimension_numbers<[1], [0], [0], [1], [0, 0, 1, 1], [], []>} : vector<16x128xbf16>, vector<128x64xbf16>, vector<16x64xf32> -> vector<16x64xf32>
    %54 = arith.addf %45, %47 : vector<16x128xf32>
    %55 = arith.truncf %54 : vector<16x128xf32> to vector<16x128xbf16>
    %56 = arith.subf %48, %49 : vector<128x64xbf16>
    %cst_33 = arith.constant dense<0.000000e+00> : vector<16x64xf32>
    %57 = tpu.matmul %55, %56, %cst_33 {dimension_numbers = #tpu.dot_dimension_numbers<[1], [0], [0], [1], [0, 0, 1, 1], [], []>} : vector<16x128xbf16>, vector<128x64xbf16>, vector<16x64xf32> -> vector<16x64xf32>
    %58 = arith.addf %51, %53 : vector<16x64xf32>
    %c0_34 = arith.constant 0 : index
    %c0_35 = arith.constant 0 : index
    %59 = vector.load %arg13[%c0_34, %c0_35] : memref<16x64xf32, #tpu.memory_space<vmem>>, vector<16x64xf32>
    tpu.vector_store %arg13[%c0_34, %c0_35], %58 {strides = array<i32>} : memref<16x64xf32, #tpu.memory_space<vmem>>, vector<16x64xf32>,
    %60 = arith.subf %57, %51 : vector<16x64xf32>
    %61 = arith.addf %60, %53 : vector<16x64xf32>
    %c0_36 = arith.constant 0 : index
    %c0_37 = arith.constant 0 : index
    %62 = vector.load %arg14[%c0_36, %c0_37] : memref<16x64xf32, #tpu.memory_space<vmem>>, vector<16x64xf32>
    tpu.vector_store %arg14[%c0_36, %c0_37], %61 {strides = array<i32>} : memref<16x64xf32, #tpu.memory_space<vmem>>, vector<16x64xf32>,
    return
  }
  func.func @transform_0(%arg0: i32) -> (i32, i32) {
    %c0_i32 = arith.constant 0 : i32
    %c0_i32_0 = arith.constant 0 : i32
    %c0_i32_1 = arith.constant 0 : i32
    return %c0_i32, %c0_i32_0 : i32, i32
  }
  func.func @transform_1(%arg0: i32) -> (i32, i32) {
    %c0_i32 = arith.constant 0 : i32
    %c0_i32_0 = arith.constant 0 : i32
    %c0_i32_1 = arith.constant 0 : i32
    return %c0_i32, %c0_i32_0 : i32, i32
  }
  func.func @transform_2(%arg0: i32) -> (i32, i32) {
    %c0_i32 = arith.constant 0 : i32
    %c0_i32_0 = arith.constant 0 : i32
    %c0_i32_1 = arith.constant 0 : i32
    return %c0_i32, %c0_i32_0 : i32, i32
  }
  func.func @transform_3(%arg0: i32) -> (i32, i32) {
    %c0_i32 = arith.constant 0 : i32
    %c0_i32_0 = arith.constant 0 : i32
    %c0_i32_1 = arith.constant 0 : i32
    return %c0_i32, %c0_i32_0 : i32, i32
  }
  func.func @transform_4(%arg0: i32) -> (i32, i32) {
    %c0_i32 = arith.constant 0 : i32
    %c0_i32_0 = arith.constant 0 : i32
    %c0_i32_1 = arith.constant 0 : i32
    return %c0_i32, %c0_i32_0 : i32, i32
  }
  func.func @transform_5(%arg0: i32) -> (i32, i32) {
    %c0_i32 = arith.constant 0 : i32
    %c0_i32_0 = arith.constant 0 : i32
    %c0_i32_1 = arith.constant 0 : i32
    return %c0_i32, %c0_i32_0 : i32, i32
  }
  func.func @transform_6(%arg0: i32) -> (i32, i32) {
    %c0_i32 = arith.constant 0 : i32
    %c0_i32_0 = arith.constant 0 : i32
    %c0_i32_1 = arith.constant 0 : i32
    return %c0_i32, %c0_i32_0 : i32, i32
  }
  func.func @transform_7(%arg0: i32) -> (i32, i32) {
    %c0_i32 = arith.constant 0 : i32
    %c0_i32_0 = arith.constant 0 : i32
    %c0_i32_1 = arith.constant 0 : i32
    return %c0_i32, %c0_i32_0 : i32, i32
  }
  func.func @transform_8(%arg0: i32) -> (i32, i32) {
    %c0_i32 = arith.constant 0 : i32
    %c0_i32_0 = arith.constant 0 : i32
    %c0_i32_1 = arith.constant 0 : i32
    return %c0_i32, %c0_i32_0 : i32, i32
  }
  func.func @transform_9(%arg0: i32) -> (i32, i32) {
    %c0_i32 = arith.constant 0 : i32
    %c0_i32_0 = arith.constant 0 : i32
    %c0_i32_1 = arith.constant 0 : i32
    return %c0_i32, %c0_i32_0 : i32, i32
  }
  func.func @transform_10(%arg0: i32) -> (i32, i32) {
    %c0_i32 = arith.constant 0 : i32
    %c0_i32_0 = arith.constant 0 : i32
    %c0_i32_1 = arith.constant 0 : i32
    return %c0_i32, %c0_i32_0 : i32, i32
  }
  func.func @transform_11(%arg0: i32) -> (i32, i32) {
    %c0_i32 = arith.constant 0 : i32
    %c0_i32_0 = arith.constant 0 : i32
    %c0_i32_1 = arith.constant 0 : i32
    return %c0_i32, %c0_i32_0 : i32, i32
  }
  func.func @transform_12(%arg0: i32) -> (i32, i32) {
    %c0_i32 = arith.constant 0 : i32
    %c0_i32_0 = arith.constant 0 : i32
    %c0_i32_1 = arith.constant 0 : i32
    return %c0_i32, %c0_i32_0 : i32, i32
  }
  func.func @transform_13(%arg0: i32) -> (i32, i32) {
    %c0_i32 = arith.constant 0 : i32
    %c0_i32_0 = arith.constant 0 : i32
    %c0_i32_1 = arith.constant 0 : i32
    return %c0_i32, %c0_i32_0 : i32, i32
  }
}

</mosaic_0001>

<bundles_post_ra>
// kernel: tpu_custom_call.1
= control target key start
LH: loop header
LB: loop body
LE: loop exit
PB: predicated region body
PF: predicated region fallthrough
CT: control target
= control target key end

     0   :  { %19 = vsyncpa [#allocation3], 0  ;;  %vm74_vm0 = vcmask 130048   ;;  %s1963_s0 = inlined_call_operand.vmem [shape: bf16[16,64], index: 0, kind: input, shape index: {}]   ;;  %s1964_s1 = inlined_call_operand.vmem [shape: bf16[16,64], index: 1, kind: input, shape index: {}]   ;;  %s1965_s2 = inlined_call_operand.vmem [shape: bf16[32,16], index: 2, kind: input, shape index: {}]   ;;  %s1966_s3 = inlined_call_operand.vmem [shape: bf16[32,16], index: 3, kind: input, shape index: {}]   ;;  %s1967_s4 = inlined_call_operand.vmem [shape: bf16[64,128], index: 4, kind: input, shape index: {}]   ;;  %s1968_s5 = inlined_call_operand.vmem [shape: bf16[64,128], index: 5, kind: input, shape index: {}]   ;;  %s1969_s6 = inlined_call_operand.vmem [shape: bf16[16,32], index: 6, kind: input, shape index: {}]   ;;  %s1970_s7 = inlined_call_operand.vmem [shape: bf16[16,32], index: 7, kind: input, shape index: {}]   ;;  %s1971_s8 = inlined_call_operand.vmem [shape: bf16[128,64], index: 8, kind: input, shape index: {}]   ;;  %s1972_s9 = inlined_call_operand.vmem [shape: bf16[128,64], index: 9, kind: input, shape index: {}]   ;;  %s1973_s10 = inlined_call_operand.vmem [shape: bf16[32,128], index: 10, kind: input, shape index: {}]   ;;  %s1974_s11 = inlined_call_operand.vmem [shape: bf16[32,128], index: 11, kind: input, shape index: {}]   ;;  %s1975_s12 = inlined_call_operand.hbm [shape: f32[16,64], index: 12, kind: output, shape index: {0}]   ;;  %s1976_s13 = inlined_call_operand.hbm [shape: f32[16,64], index: 13, kind: output, shape index: {1}]  }
   0x1   :  { %v46_v0 = vld [vmem:[%s1963_s0] sm:$0xf]  ;;  %v47_v1 = vld [vmem:[%s1963_s0 + $0x4] sm:$0xf]  ;;  %v52_v16 = vld [vmem:[%s1965_s2 + $0x8] sm:$0xf] }
   0x2   :  { %v48_v2 = vld [vmem:[%s1964_s1] sm:$0xf]  ;;  %v1146_v3 = vcombine.low %v46_v0, %v47_v1  ;;  %v49_v4 = vld [vmem:[%s1964_s1 + $0x4] sm:$0xf]  ;;  %v53_v17 = vld [vmem:[%s1965_s2 + $0xc] sm:$0xf] }
   0x3   :  { %v205_v5 = vadd.bf16 %v48_v2, %v46_v0  ;;  %v50_v6 = vld [vmem:[%s1965_s2] sm:$0xf]  ;;  %v51_v7 = vld [vmem:[%s1965_s2 + $0x4] sm:$0xf]  ;;  %v1151_v8 = vcombine.low %v48_v2, %v49_v4  ;;  %v206_v9 = vadd.bf16 %v49_v4, %v47_v1  ;;  %v56_v18 = vld [vmem:[%s1966_s3 + $0x8] sm:$0xf]  ;;  %v1145_v19 = vcombine.low %v52_v16, %v53_v17 }
   0x4   :  { %v1144_v10 = vcombine.low %v50_v6, %v51_v7  ;;  %v54_v11 = vld [vmem:[%s1966_s3] sm:$0xf]  ;;  %v55_v12 = vld [vmem:[%s1966_s3 + $0x4] sm:$0xf]  ;;  %1288 = vmatprep.subr.bf16.mxu0 %v1146_v3  ;;  %v57_v20 = vld [vmem:[%s1966_s3 + $0xc] sm:$0xf] }
   0x5   :  { %v1149_v13 = vcombine.low %v54_v11, %v55_v12  ;;  %v201_v14 = vadd.bf16 %v54_v11, %v50_v6  ;;  %v202_v15 = vadd.bf16 %v55_v12, %v51_v7  ;;  %1294 = vmatprep.subr.bf16.mxu1 %v1151_v8  ;;  %1289 = vmatpush3.bf16.msra.mxu0 %v1146_v3  ;;  %v290_v22 = vld [vmem:[%s1967_s4] sm:$0xf]  ;;  %v291_v23 = vld [vmem:[%s1967_s4 + $0x4] sm:$0xf]  ;;  %v1634_v26 = vld [vmem:[%s1967_s4 + $0x8] sm:$0xf] }
   0x6   :  { %v1156_v21 = vcombine.low %v205_v5, %v206_v9  ;;  %1295 = vmatpush3.bf16.msra.mxu1 %v1151_v8  ;;  %1290 = vmatprep.mubr.msk.bf16.mxu0 %vm74_vm0, %v1144_v10  ;;  %v1150_v25 = vcombine.low %v56_v18, %v57_v20  ;;  %v1639_v27 = vld [vmem:[%s1967_s4 + $0xc] sm:$0xf] }
   0x7   :  { %v1154_v24 = vcombine.low %v201_v14, %v202_v15 }
   0x8   :  { %20 = vsyncpa [#allocation5], 0  ;;  %1296 = vmatprep.mubr.msk.bf16.mxu1 %vm74_vm0, %v1149_v13  ;;  %1300 = vmatprep.subr.bf16.mxu0 %v1156_v21  ;;  %v1159_v28 = vcombine.low %v290_v22, %v291_v23  ;;  %v203_v29 = vadd.bf16 %v56_v18, %v52_v16  ;;  %v204_v30 = vadd.bf16 %v57_v20, %v53_v17  ;;  %v294_v33 = vld [vmem:[%s1967_s4 + $0x10] sm:$0xf]  ;;  %v295_v34 = vld [vmem:[%s1967_s4 + $0x14] sm:$0xf] }
   0x9   :  { %1291 = vmatmul.mubr.msk.bf16.vlgmr.msra.gmra.mrb[0].mxu0 %vm74_vm0, %v1145_v19  ;;  %v1160_v31 = vcombine.low %v1634_v26, %v1639_v27  ;;  %1297 = vmatmul.mubr.msk.bf16.vlgmr.msra.gmra.mrb[0].mxu1 %vm74_vm0, %v1150_v25  ;;  %v1161_v35 = vcombine.low %v294_v33, %v295_v34  ;;  %v296_v36 = vld [vmem:[%s1967_s4 + $0x18] sm:$0xf]  ;;  %v297_v37 = vld [vmem:[%s1967_s4 + $0x1c] sm:$0xf]  ;;  %v298_v39 = vld [vmem:[%s1968_s5] sm:$0xf] }
   0xa   :  { %1301 = vmatpush3.bf16.msra.mxu0 %v1156_v21  ;;  %1302 = vmatprep.mubr.msk.bf16.mxu0 %vm74_vm0, %v1154_v24  ;;  %v1155_v32 = vcombine.low %v203_v29, %v204_v30  ;;  %v1162_v38 = vcombine.low %v296_v36, %v297_v37  ;;  %v299_v40 = vld [vmem:[%s1968_s5 + $0x4] sm:$0xf]  ;;  %v475_v42 = vadd.bf16 %v298_v39, %v290_v22  ;;  %v302_v45 = vld [vmem:[%s1968_s5 + $0x10] sm:$0xf]  ;;  %v303_v46 = vld [vmem:[%s1968_s5 + $0x14] sm:$0xf] }
   0xb   :  { %1306 = vmatprep.subr.bf16.mxu1 %v1159_v28  ;;  %v1165_v41 = vcombine.low %v298_v39, %v299_v40  ;;  %v476_v43 = vadd.bf16 %v299_v40, %v291_v23  ;;  %v479_v47 = vadd.bf16 %v302_v45, %v294_v33  ;;  %v480_v48 = vadd.bf16 %v303_v46, %v295_v34  ;;  %v304_v50 = vld [vmem:[%s1968_s5 + $0x18] sm:$0xf]  ;;  %v305_v51 = vld [vmem:[%s1968_s5 + $0x1c] sm:$0xf]  ;;  %v300_v3 = vld [vmem:[%s1968_s5 + $0x8] sm:$0xf] }
   0xc   :  { %1307 = vmatpush3.bf16.msra.mxu1 %v1159_v28  ;;  %v481_v52 = vadd.bf16 %v304_v50, %v296_v36  ;;  %v482_v53 = vadd.bf16 %v305_v51, %v297_v37  ;;  %v301_v4 = vld [vmem:[%s1968_s5 + $0xc] sm:$0xf]  ;;  %vm332_vm1 = vcmask 523264   ;;  %v1167_v18 = vcombine.low %v302_v45, %v303_v46 }
   0xd   :  { %1308 = vmatprep.subr.bf16.mxu1 %v1160_v31  ;;  %v1666_v44 = vcombine.low %v475_v42, %v476_v43  ;;  %v1674_v49 = vcombine.low %v479_v47, %v480_v48  ;;  %v1166_v8 = vcombine.low %v300_v3, %v301_v4  ;;  %v1168_v29 = vcombine.low %v304_v50, %v305_v51  ;;  %v1223_v46 = vld [vmem:[%s1973_s10 + $0x8] sm:$0xff]   ;;  %v1208_v48 = vld [vmem:[%s1973_s10] sm:$0xff]  }
   0xe   :  { %v1174_v54 = vcombine.low %v481_v52, %v482_v53  ;;  %v478_v33 = vadd.bf16 %v301_v4, %v1639_v27  ;;  %vm1513_vm2 = vmmov 0   ;;  %v1224_v47 = vld [vmem:[%s1974_s11 + $0x8] sm:$0xff]   ;;  %v1213_v50 = vunpack.c.l.bf16 %v1223_v46 }
   0xf   :  { %v1221_v51 = vunpack.c.l.bf16 %v1224_v47  ;;  %v1209_v52 = vunpack.c.l.bf16 %v1208_v48  ;;  %vm625_vm3 = vcmask 261120  }
  0x10   :  { %1309 = vmatpush3.bf16.msra.mxu1 %v1160_v31 }
  0x11   :  { %1303 = vmatmul.mubr.msk.bf16.vlgmr.msra.gmra.mrb[4].mxu0 %vm74_vm0, %v1155_v32  ;;  %1310 = vmatprep.subr.bf16.mxu1 %v1161_v35  ;;  %v477_v32 = vadd.bf16 %v300_v3, %v1634_v26  ;;  %v1512_v26 = vmov 0.0  }
  0x12   :  { %1342 = vmatprep.subr.bf16.mxu0 %v1512_v26  ;;  %1346 = vmatprep.mubr.msk.bf16.mxu0 %vm1513_vm2, %v1512_v26 }
  0x13   :  { %v1172_v34 = vcombine.low %v477_v32, %v478_v33 }
  0x14   :  { %1311 = vmatpush3.bf16.msra.mxu1 %v1161_v35 }
  0x15   :  { %1312 = vmatprep.subr.bf16.mxu1 %v1162_v38 }
  0x18   :  { %1313 = vmatpush3.bf16.msra.mxu1 %v1162_v38 }
  0x19   :  { %1318 = vmatprep.subr.bf16.mxu1 %v1165_v41 }
  0xdc   :  { %v1292_v55 = vpop.f32.mrb[0].mxu0  ;;  %v1298_v56 = vpop.f32.mrb[0].mxu1 }
  0xdd   :  { %v115_v57 = vpop.f32.mrb[1].mxu0  ;;  %v280_v58 = vsub.f32 %v1292_v55, %v1298_v56  ;;  %v186_v59 = vpop.f32.mrb[1].mxu1 }
  0xde   :  { %v1293_v60 = vpop.f32.mrb[2].mxu0  ;;  %v278_v61 = vsub.f32 %v115_v57, %v186_v59  ;;  %v1299_v62 = vpop.f32.mrb[2].mxu1 }
  0xdf   :  { %v118_v63 = vpop.f32.mrb[3].mxu0  ;;  %v281_v0 = vsub.f32 %v1293_v60, %v1299_v62  ;;  %v189_v1 = vpop.f32.mrb[3].mxu1 }
  0xe0   :  { %v279_v2 = vsub.f32 %v118_v63, %v189_v1 }
  0xe1   :  { %v307_v5 = vpack.c.bf16 %v281_v0, %v280_v58 }
  0xe2   :  { %v306_v6 = vpack.c.bf16 %v279_v2, %v278_v61 }
  0xe4   :  { %v1304_v7 = vpop.f32.mrb[4].mxu0  ;;  %1314 = vmatprep.mubr.msk.bf16.mxu1 %vm332_vm1, %v306_v6 }
  0xe5   :  { %v284_v9 = vsub.f32 %v1304_v7, %v1292_v55  ;;  %v263_v10 = vpop.f32.mrb[5].mxu0  ;;  %1315 = vmatmul.mubr.msk.bf16.vlgmr.msra.gmra.mrb[4].mxu1 %vm332_vm1, %v307_v5  ;;  %v1222_v55 = vunpack.c.h.bf16 %v1224_v47 }
  0xe6   :  { %v282_v11 = vsub.f32 %v263_v10, %v115_v57  ;;  %v1305_v12 = vpop.f32.mrb[6].mxu0  ;;  %1319 = vmatpush3.bf16.msra.mxu1 %v1165_v41  ;;  %v1210_v57 = vunpack.c.h.bf16 %v1208_v48  ;;  %v1735_v48 = vld [vmem:[%s1972_s9] sm:$0xf] }
  0xe7   :  { %v288_v13 = vsub.f32 %v284_v9, %v1298_v56  ;;  %v285_v14 = vsub.f32 %v1305_v12, %v1293_v60  ;;  %v266_v15 = vpop.f32.mrb[7].mxu0  ;;  %1320 = vmatprep.subr.bf16.mxu1 %v1166_v8 }
  0xe8   :  { %v286_v16 = vsub.f32 %v282_v11, %v186_v59  ;;  %v283_v17 = vsub.f32 %v266_v15, %v118_v63 }
  0xe9   :  { %v471_v19 = vadd.f32 %v288_v13, %v280_v58  ;;  %v289_v20 = vsub.f32 %v285_v14, %v1299_v62 }
  0xea   :  { %v469_v21 = vadd.f32 %v286_v16, %v278_v61  ;;  %v287_v22 = vsub.f32 %v283_v17, %v189_v1  ;;  %1321 = vmatpush3.bf16.msra.mxu1 %v1166_v8 }
  0xeb   :  { %v389_v23 = vpack.c.bf16 %v289_v20, %v288_v13  ;;  %v472_v24 = vadd.f32 %v289_v20, %v281_v0  ;;  %1322 = vmatprep.subr.bf16.mxu1 %v1167_v18 }
  0xec   :  { %v388_v25 = vpack.c.bf16 %v287_v22, %v286_v16  ;;  %v470_v28 = vadd.f32 %v287_v22, %v279_v2 }
  0xed   :  { %v474_v30 = vpack.c.bf16 %v472_v24, %v471_v19 }
  0xee   :  { %v473_v31 = vpack.c.bf16 %v470_v28, %v469_v21  ;;  %1326 = vmatprep.mubr.msk.bf16.mxu1 %vm332_vm1, %v388_v25  ;;  %1323 = vmatpush3.bf16.msra.mxu1 %v1167_v18 }
  0xef   :  { %1324 = vmatprep.subr.bf16.mxu1 %v1168_v29 }
  0xf2   :  { %1325 = vmatpush3.bf16.msra.mxu1 %v1168_v29 }
  0xf3   :  { %1330 = vmatprep.subr.bf16.mxu1 %v1666_v44 }
  0xf5   :  { %1327 = vmatmul.mubr.msk.bf16.vlgmr.msra.gmra.mrb[8].mxu1 %vm332_vm1, %v389_v23 }
  0xf6   :  { %1331 = vmatpush3.bf16.msra.mxu1 %v1666_v44  ;;  %1338 = vmatprep.mubr.msk.bf16.mxu1 %vm332_vm1, %v473_v31 }
  0xf7   :  { %1332 = vmatprep.subr.bf16.mxu1 %v1172_v34 }
  0xfa   :  { %1333 = vmatpush3.bf16.msra.mxu1 %v1172_v34 }
  0xfb   :  { %1334 = vmatprep.subr.bf16.mxu1 %v1674_v49 }
  0xfe   :  { %1335 = vmatpush3.bf16.msra.mxu1 %v1674_v49  ;;  %v1216_v49 = vld [vmem:[%s1974_s11] sm:$0xff]  }
  0xff   :  { %1336 = vmatprep.subr.bf16.mxu1 %v1174_v54  ;;  %v1217_v53 = vunpack.c.l.bf16 %v1216_v49  ;;  %v1218_v62 = vunpack.c.h.bf16 %v1216_v49  ;;  %v1740_v49 = vld [vmem:[%s1972_s9 + $0x4] sm:$0xf] }
 0x102   :  { %1337 = vmatpush3.bf16.msra.mxu1 %v1174_v54  ;;  %v1214_v54 = vunpack.c.h.bf16 %v1223_v46 }
 0x103   :  { %1358 = vmatprep.subr.bf16.mxu1 %v1512_v26 }
 0x105   :  { %1339 = vmatmul.mubr.msk.bf16.vlgmr.msra.gmra.mrb[12].mxu1 %vm332_vm1, %v474_v30 }
 0x106   :  { %1362 = vmatprep.mubr.msk.bf16.mxu1 %vm1513_vm2, %v1512_v26 }
 0x1b8   :  { %v1316_v27 = vpop.f32.mrb[4].mxu1 }
 0x1b9   :  { %v373_v35 = vpop.f32.mrb[5].mxu1 }
 0x1ba   :  { %v1317_v36 = vpop.f32.mrb[6].mxu1 }
 0x1bb   :  { %v376_v37 = vpop.f32.mrb[7].mxu1 }
 0x1c8   :  { %v1328_v38 = vpop.f32.mrb[8].mxu1 }
 0x1c9   :  { %v564_v39 = vsub.f32 %v1316_v27, %v1328_v38  ;;  %v454_v40 = vpop.f32.mrb[9].mxu1 }
 0x1ca   :  { %v562_v41 = vsub.f32 %v373_v35, %v454_v40  ;;  %v1329_v42 = vpop.f32.mrb[10].mxu1 }
 0x1cb   :  { %v565_v43 = vsub.f32 %v1317_v36, %v1329_v42  ;;  %v457_v44 = vpop.f32.mrb[11].mxu1  ;;  %v592_v60 = vmul.f32 %v1213_v50, %v564_v39  ;;  %v604_v61 = vmul.f32 %v1221_v51, %v564_v39  ;;  %v615_v39 = vld [vmem:[%s1969_s6 + $0x4] sm:$0xf] }
 0x1cc   :  { %v563_v45 = vsub.f32 %v376_v37, %v457_v44  ;;  %v590_v1 = vmul.f32 %v1209_v52, %v562_v41  ;;  %v602_v2 = vmul.f32 %v1217_v53, %v562_v41  ;;  %v616_v41 = vld [vmem:[%s1970_s7] sm:$0xf] }
 0x1cd   :  { %v593_v6 = vmul.f32 %v1214_v54, %v565_v43  ;;  %v605_v7 = vmul.f32 %v1222_v55, %v565_v43 }
 0x1ce   :  { %v591_v10 = vmul.f32 %v1210_v57, %v563_v45  ;;  %v603_v14 = vmul.f32 %v1218_v62, %v563_v45 }
 0x1d8   :  { %v1340_v56 = vpop.f32.mrb[12].mxu1 }
 0x1d9   :  { %v568_v58 = vsub.f32 %v1340_v56, %v1316_v27  ;;  %v547_v59 = vpop.f32.mrb[13].mxu1 }
 0x1da   :  { %v566_v63 = vsub.f32 %v547_v59, %v373_v35  ;;  %v1341_v0 = vpop.f32.mrb[14].mxu1  ;;  %v614_v35 = vld [vmem:[%s1969_s6] sm:$0xf]  ;;  %v1784_v59 = vld [vmem:[%s1972_s9 + $0x14] sm:$0xf] }
 0x1db   :  { %v572_v3 = vsub.f32 %v568_v58, %v1328_v38  ;;  %v569_v4 = vsub.f32 %v1341_v0, %v1317_v36  ;;  %v550_v5 = vpop.f32.mrb[15].mxu1  ;;  %v721_v45 = vadd.bf16 %v616_v41, %v614_v35  ;;  %v1177_v47 = vcombine.low %v614_v35, %v615_v39  ;;  %v1779_v58 = vld [vmem:[%s1972_s9 + $0x10] sm:$0xf]  ;;  %v1806_v0 = vld [vmem:[%s1972_s9 + $0x18] sm:$0xf] }
 0x1dc   :  { %v570_v8 = vsub.f32 %v566_v63, %v454_v40  ;;  %v567_v9 = vsub.f32 %v550_v5, %v376_v37  ;;  %v1193_v63 = vcombine.low %v1779_v58, %v1784_v59 }
 0x1dd   :  { %v596_v11 = vmul.f32 %v1221_v51, %v572_v3  ;;  %v608_v12 = vmul.f32 %v1213_v50, %v572_v3  ;;  %v573_v13 = vsub.f32 %v569_v4, %v1329_v42  ;;  %v617_v42 = vld [vmem:[%s1970_s7 + $0x4] sm:$0xf]  ;;  %v1191_v51 = vcombine.low %v1735_v48, %v1740_v49  ;;  %v1821_v3 = vld [vmem:[%s1971_s8 + $0x10] sm:$0xf]  ;;  %v1826_v4 = vld [vmem:[%s1971_s8 + $0x14] sm:$0xf] }
 0x1de   :  { %v594_v15 = vmul.f32 %v1217_v53, %v570_v8  ;;  %v606_v16 = vmul.f32 %v1209_v52, %v570_v8  ;;  %v571_v17 = vsub.f32 %v567_v9, %v457_v44  ;;  %v722_v46 = vadd.bf16 %v617_v42, %v615_v39  ;;  %v1750_v52 = vld [vmem:[%s1972_s9 + $0x8] sm:$0xf]  ;;  %v1755_v53 = vld [vmem:[%s1972_s9 + $0xc] sm:$0xf]  ;;  %v1842_v8 = vld [vmem:[%s1971_s8 + $0x1c] sm:$0xf] }
 0x1df   :  { %v600_v18 = vsub.f32 %v592_v60, %v596_v11  ;;  %v612_v19 = vadd.f32 %v608_v12, %v604_v61  ;;  %v597_v20 = vmul.f32 %v1222_v55, %v573_v13  ;;  %v609_v21 = vmul.f32 %v1214_v54, %v573_v13  ;;  %v1764_v54 = vld [vmem:[%s1971_s8] sm:$0xf]  ;;  %v1769_v55 = vld [vmem:[%s1971_s8 + $0x4] sm:$0xf]  ;;  %v1792_v61 = vld [vmem:[%s1971_s8 + $0x8] sm:$0xf] }
 0x1e0   :  { %v598_v22 = vsub.f32 %v590_v1, %v594_v15  ;;  %v610_v23 = vadd.f32 %v606_v16, %v602_v2  ;;  %v595_v24 = vmul.f32 %v1218_v62, %v571_v17  ;;  %v607_v25 = vmul.f32 %v1210_v57, %v571_v17  ;;  %v1797_v62 = vld [vmem:[%s1971_s8 + $0xc] sm:$0xf]  ;;  %v1811_v1 = vld [vmem:[%s1972_s9 + $0x1c] sm:$0xf]  ;;  %v791_v11 = vld [vmem:[%s1971_s8 + $0x24] sm:$0xf] }
 0x1e1   :  { %v725_v28 = vsub.f32 %v612_v19, %v600_v18  ;;  %v601_v29 = vsub.f32 %v593_v6, %v597_v20  ;;  %v613_v30 = vadd.f32 %v609_v21, %v605_v7  ;;  %v1181_v50 = vcombine.low %v721_v45, %v722_v46  ;;  %v1837_v7 = vld [vmem:[%s1971_s8 + $0x18] sm:$0xf]  ;;  %v806_v13 = vld [vmem:[%s1972_s9 + $0x20] sm:$0xf]  ;;  %v792_v16 = vld [vmem:[%s1971_s8 + $0x28] sm:$0xf] }
 0x1e2   :  { %v723_v31 = vsub.f32 %v610_v23, %v598_v22  ;;  %v599_v32 = vsub.f32 %v591_v10, %v595_v24  ;;  %v611_v33 = vadd.f32 %v607_v25, %v603_v14  ;;  %v1192_v56 = vcombine.low %v1750_v52, %v1755_v53  ;;  %v790_v10 = vld [vmem:[%s1971_s8 + $0x20] sm:$0xf]  ;;  %v807_v14 = vld [vmem:[%s1972_s9 + $0x24] sm:$0xf]  ;;  %v793_v17 = vld [vmem:[%s1971_s8 + $0x2c] sm:$0xf] }
 0x1e3   :  { %v726_v34 = vsub.f32 %v613_v30, %v601_v29  ;;  %v619_v27 = vpack.c.bf16 %v601_v29, %v600_v18  ;;  %v671_v36 = vpack.c.bf16 %v613_v30, %v612_v19  ;;  %v1179_v57 = vcombine.low %v616_v41, %v617_v42  ;;  %v808_v19 = vld [vmem:[%s1972_s9 + $0x28] sm:$0xf]  ;;  %v809_v20 = vld [vmem:[%s1972_s9 + $0x2c] sm:$0xf]  ;;  %v810_v25 = vld [vmem:[%s1972_s9 + $0x30] sm:$0xf] }
 0x1e4   :  { %v724_v37 = vsub.f32 %v611_v33, %v599_v32  ;;  %v618_v38 = vpack.c.bf16 %v599_v32, %v598_v22  ;;  %v670_v40 = vpack.c.bf16 %v611_v33, %v610_v23  ;;  %v1183_v60 = vcombine.low %v1764_v54, %v1769_v55  ;;  %v794_v22 = vld [vmem:[%s1971_s8 + $0x30] sm:$0xf]  ;;  %v795_v23 = vld [vmem:[%s1971_s8 + $0x34] sm:$0xf]  ;;  %v796_v30 = vld [vmem:[%s1971_s8 + $0x38] sm:$0xf] }
 0x1e5   :  { %v728_v43 = vpack.c.bf16 %v726_v34, %v725_v28  ;;  %v1184_v2 = vcombine.low %v1792_v61, %v1797_v62  ;;  %v1194_v5 = vcombine.low %v1806_v0, %v1811_v1  ;;  %v1185_v6 = vcombine.low %v1821_v3, %v1826_v4  ;;  %v811_v28 = vld [vmem:[%s1972_s9 + $0x34] sm:$0xf]  ;;  %v812_v33 = vld [vmem:[%s1972_s9 + $0x38] sm:$0xf]  ;;  %v813_v34 = vld [vmem:[%s1972_s9 + $0x3c] sm:$0xf] }
 0x1e6   :  { %1343 = vmatpush3.bf16.msra.mxu0 %v618_v38  ;;  %v727_v44 = vpack.c.bf16 %v724_v37, %v723_v31  ;;  %v1186_v9 = vcombine.low %v1837_v7, %v1842_v8  ;;  %v1187_v12 = vcombine.low %v790_v10, %v791_v11  ;;  %v1195_v15 = vcombine.low %v806_v13, %v807_v14  ;;  %v797_v31 = vld [vmem:[%s1971_s8 + $0x3c] sm:$0xf]  ;;  %s1514_s8 = smov [#allocation2]  }
 0x1e7   :  { %1344 = vmatprep.subr.bf16.mxu0 %v1512_v26  ;;  %v1188_v18 = vcombine.low %v792_v16, %v793_v17  ;;  %v1196_v21 = vcombine.low %v808_v19, %v809_v20  ;;  %v1189_v24 = vcombine.low %v794_v22, %v795_v23  ;;  %v1197_v29 = vcombine.low %v810_v25, %v811_v28  ;;  %s1117_s9 = sshll.u32 %s1514_s8, 4  ;;  %s1118_s9 = int_to_ptr.vmem [resolvable:$true] %s1117_s9 }
 0x1e8   :  { %1359 = vmatpush3.bf16.msra.mxu1 %v727_v44  ;;  %v1190_v32 = vcombine.low %v796_v30, %v797_v31  ;;  %v1005_v35 = vsub.bf16 %v790_v10, %v806_v13  ;;  %v1007_v38 = vsub.bf16 %v792_v16, %v808_v19  ;;  %v1008_v39 = vsub.bf16 %v793_v17, %v809_v20  ;;  %s1464_s0 = scalar_lea.vmem %s1118_s9, 256  ;;  %p1469_p1 = scmp.lt.s32.totalorder %s1118_s9, %s1118_s9 }
 0x1e9   :  { %1360 = vmatprep.subr.bf16.mxu1 %v1512_v26  ;;  %v1009_v41 = vsub.bf16 %v794_v22, %v810_v25  ;;  %v1010_v42 = vsub.bf16 %v795_v23, %v811_v28  ;;  %v1011_v44 = vsub.bf16 %v796_v30, %v812_v33  ;;  %v1012_v45 = vsub.bf16 %v797_v31, %v813_v34  ;;  %p1465_p0 = scmp.ne.s32.totalorder %s1118_s9, %s1464_s0  ;;  %p1470_p2 = scmp.lt.s32.totalorder %s1464_s0, %s1464_s0 }
 0x1ea   :  { %1345 = vmatpush3.bf16.msra.mxu0 %v619_v27  ;;  %v1198_v27 = vcombine.low %v812_v33, %v813_v34  ;;  %v997_v10 = vsub.bf16 %v1764_v54, %v1735_v48  ;;  %v1000_v22 = vsub.bf16 %v1797_v62, %v1755_v53  ;;  %v1002_v25 = vsub.bf16 %v1826_v4, %v1784_v59 }
 0x1eb   :  { %1350 = vmatprep.subr.bf16.mxu0 %v1512_v26  ;;  %v1206_v46 = vcombine.low %v1011_v44, %v1012_v45  ;;  %v1003_v53 = vsub.bf16 %v1837_v7, %v1806_v0  ;;  %p1471_p3 = por %p1470_p2, %p1469_p1 }
 0x1ec   :  { %1361 = vmatpush3.bf16.msra.mxu1 %v728_v43  ;;  %v1205_v43 = vcombine.low %v1009_v41, %v1010_v42 }
 0x1ed   :  { %1347 = vmatmul.mubr.msk.bf16.vlgmr.msra.gmra.mrb[8].mxu0 %vm625_vm3, %v1177_v47  ;;  %1386 = vmatprep.subr.bf16.mxu1 %v1512_v26  ;;  %p1472_p4 = pnand %p1471_p3, %p1465_p0 }
 0x1ee   :  { %1351 = vmatpush3.bf16.msra.mxu0 %v670_v40  ;;  %1354 = vmatprep.mubr.msk.bf16.mxu0 %vm1513_vm2, %v1512_v26  ;;  %v1204_v40 = vcombine.low %v1007_v38, %v1008_v39 }
 0x1ef   :  { %1363 = vmatmul.mubr.msk.bf16.vlgmr.msra.gmra.mrb[16].mxu1 %vm625_vm3, %v1181_v50  ;;  %1352 = vmatprep.subr.bf16.mxu0 %v1512_v26 }
 0x1f0   :  { %1387 = vmatpush3.bf16.msra.mxu1 %v1191_v51  ;;  %1402 = vmatprep.mubr.msk.bf16.mxu1 %vm1513_vm2, %v1512_v26 }
 0x1f1   :  { %1388 = vmatprep.subr.bf16.mxu1 %v1512_v26 }
 0x1f2   :  { %1353 = vmatpush3.bf16.msra.mxu0 %v671_v36  ;;  %v1006_v36 = vsub.bf16 %v791_v11, %v807_v14  ;;  %v998_v11 = vsub.bf16 %v1769_v55, %v1740_v49  ;;  %v1001_v55 = vsub.bf16 %v1821_v3, %v1779_v58 }
 0x1f3   :  { %1366 = vmatprep.subr.bf16.mxu0 %v1512_v26 }
 0x1f4   :  { %1389 = vmatpush3.bf16.msra.mxu1 %v1192_v56  ;;  %v1203_v37 = vcombine.low %v1005_v35, %v1006_v36  ;;  %v1199_v20 = vcombine.low %v997_v10, %v998_v11 }
 0x1f5   :  { %1355 = vmatmul.mubr.msk.bf16.vlgmr.msra.gmra.mrb[12].mxu0 %vm625_vm3, %v1179_v57  ;;  %1390 = vmatprep.subr.bf16.mxu1 %v1512_v26 }
 0x1f6   :  { %1367 = vmatpush3.bf16.msra.mxu0 %v1183_v60  ;;  %1382 = vmatprep.mubr.msk.bf16.mxu0 %vm1513_vm2, %v1512_v26 }
 0x1f7   :  { %1368 = vmatprep.subr.bf16.mxu0 %v1512_v26 }
 0x1f8   :  { %1391 = vmatpush3.bf16.msra.mxu1 %v1193_v63 }
 0x1f9   :  { %1392 = vmatprep.subr.bf16.mxu1 %v1512_v26 }
 0x1fa   :  { %1369 = vmatpush3.bf16.msra.mxu0 %v1184_v2 }
 0x1fb   :  { %1370 = vmatprep.subr.bf16.mxu0 %v1512_v26 }
 0x1fc   :  { %1393 = vmatpush3.bf16.msra.mxu1 %v1194_v5 }
 0x1fd   :  { %1394 = vmatprep.subr.bf16.mxu1 %v1512_v26 }
 0x1fe   :  { %1371 = vmatpush3.bf16.msra.mxu0 %v1185_v6 }
 0x1ff   :  { %1372 = vmatprep.subr.bf16.mxu0 %v1512_v26 }
 0x200   :  { %1395 = vmatpush3.bf16.msra.mxu1 %v1195_v15 }
 0x201   :  { %1396 = vmatprep.subr.bf16.mxu1 %v1512_v26 }
 0x202   :  { %1373 = vmatpush3.bf16.msra.mxu0 %v1186_v9 }
 0x203   :  { %1374 = vmatprep.subr.bf16.mxu0 %v1512_v26 }
 0x204   :  { %1397 = vmatpush3.bf16.msra.mxu1 %v1196_v21  ;;  %v999_v21 = vsub.bf16 %v1792_v61, %v1750_v52  ;;  %v1201_v52 = vcombine.low %v1001_v55, %v1002_v25  ;;  %v1004_v61 = vsub.bf16 %v1842_v8, %v1811_v1 }
 0x205   :  { %1398 = vmatprep.subr.bf16.mxu1 %v1512_v26 }
 0x206   :  { %1375 = vmatpush3.bf16.msra.mxu0 %v1187_v12  ;;  %v1200_v49 = vcombine.low %v999_v21, %v1000_v22  ;;  %v1202_v58 = vcombine.low %v1003_v53, %v1004_v61 }
 0x207   :  { %1376 = vmatprep.subr.bf16.mxu0 %v1512_v26 }
 0x208   :  { %1399 = vmatpush3.bf16.msra.mxu1 %v1197_v29 }
 0x209   :  { %1400 = vmatprep.subr.bf16.mxu1 %v1512_v26 }
 0x20a   :  { %1377 = vmatpush3.bf16.msra.mxu0 %v1188_v18 }
 0x20b   :  { %1378 = vmatprep.subr.bf16.mxu0 %v1512_v26 }
 0x20c   :  { %1401 = vmatpush3.bf16.msra.mxu1 %v1198_v27 }
 0x20e   :  { %1379 = vmatpush3.bf16.msra.mxu0 %v1189_v24 }
 0x20f   :  { %1380 = vmatprep.subr.bf16.mxu0 %v1512_v26 }
 0x212   :  { %1381 = vmatpush3.bf16.msra.mxu0 %v1190_v32 }
 0x213   :  { %1406 = vmatprep.subr.bf16.mxu0 %v1512_v26 }
 0x2c0   :  { %v663_v47 = vpop.f32.mrb[8].mxu0 }
 0x2c1   :  { %v1348_v50 = vpop.f32.mrb[9].mxu0 }
 0x2c2   :  { %v666_v51 = vpop.f32.mrb[10].mxu0  ;;  %v773_v56 = vpop.f32.mrb[16].mxu1 }
 0x2c3   :  { %v774_v57 = vadd.f32 %v773_v56, %v663_v47  ;;  %v1349_v60 = vpop.f32.mrb[11].mxu0  ;;  %v1364_v63 = vpop.f32.mrb[17].mxu1 }
 0x2c4   :  { %v776_v2 = vpop.f32.mrb[18].mxu1 }
 0x2c5   :  { %v777_v5 = vadd.f32 %v776_v2, %v666_v51  ;;  %v1365_v6 = vpop.f32.mrb[19].mxu1 }
 0x2c8   :  { %v714_v9 = vpop.f32.mrb[12].mxu0 }
 0x2c9   :  { %v729_v12 = vadd.f32 %v714_v9, %v663_v47  ;;  %v780_v13 = vsub.f32 %v774_v57, %v714_v9  ;;  %v1356_v14 = vpop.f32.mrb[13].mxu0 }
 0x2ca   :  { %v717_v15 = vpop.f32.mrb[14].mxu0 }
 0x2cb   :  { %v994_v16 = vadd.f32 %v780_v13, %v729_v12  ;;  %v730_v17 = vadd.f32 %v717_v15, %v666_v51  ;;  %v781_v18 = vsub.f32 %v777_v5, %v717_v15  ;;  %v1357_v19 = vpop.f32.mrb[15].mxu0 }
 0x2cd   :  { %v814_v23 = vpack.c.bf16 %v730_v17, %v729_v12  ;;  %v904_v48 = vpack.c.bf16 %v781_v18, %v780_v13  ;;  %v995_v54 = vadd.f32 %v781_v18, %v730_v17 }
 0x2cf   :  { %v996_v24 = vpack.c.bf16 %v995_v54, %v994_v16  ;;  %1383 = vmatmul.mubr.bf16.vlgmr.msra.gmra.mrb[16].mxu0 %v814_v23  ;;  %1403 = vmatmul.mubr.bf16.vlgmr.msra.gmra.mrb[20].mxu1 %v904_v48 }
 0x2d0   :  { %1407 = vmatpush3.bf16.msra.mxu0 %v1199_v20  ;;  %1422 = vmatprep.mubr.msk.bf16.mxu0 %vm1513_vm2, %v1512_v26 }
 0x2d1   :  { %1408 = vmatprep.subr.bf16.mxu0 %v1512_v26 }
 0x2d4   :  { %1409 = vmatpush3.bf16.msra.mxu0 %v1200_v49 }
 0x2d5   :  { %1410 = vmatprep.subr.bf16.mxu0 %v1512_v26 }
 0x2d8   :  { %1411 = vmatpush3.bf16.msra.mxu0 %v1201_v52 }
 0x2d9   :  { %1412 = vmatprep.subr.bf16.mxu0 %v1512_v26 }
 0x2dc   :  { %1413 = vmatpush3.bf16.msra.mxu0 %v1202_v58 }
 0x2dd   :  { %1414 = vmatprep.subr.bf16.mxu0 %v1512_v26 }
 0x2e0   :  { %1415 = vmatpush3.bf16.msra.mxu0 %v1203_v37 }
 0x2e1   :  { %1416 = vmatprep.subr.bf16.mxu0 %v1512_v26 }
 0x2e4   :  { %1417 = vmatpush3.bf16.msra.mxu0 %v1204_v40 }
 0x2e5   :  { %1418 = vmatprep.subr.bf16.mxu0 %v1512_v26 }
 0x2e8   :  { %1419 = vmatpush3.bf16.msra.mxu0 %v1205_v43 }
 0x2e9   :  { %1420 = vmatprep.subr.bf16.mxu0 %v1512_v26 }
 0x2ec   :  { %1421 = vmatpush3.bf16.msra.mxu0 %v1206_v46 }
 0x2ef   :  { %1423 = vmatmul.mubr.bf16.vlgmr.msra.gmra.mrb[20].mxu0 %v996_v24 }
 0x3a2   :  { %v897_v59 = vpop.f32.mrb[16].mxu0  ;;  %v987_v62 = vpop.f32.mrb[20].mxu1 }
 0x3a3   :  { %v1102_v0 = vadd.f32 %v987_v62, %v897_v59  ;;  %v1384_v1 = vpop.f32.mrb[17].mxu0  ;;  %v1404_v3 = vpop.f32.mrb[21].mxu1 }
 0x3a4   :  { %v900_v4 = vpop.f32.mrb[18].mxu0  ;;  %v990_v7 = vpop.f32.mrb[22].mxu1 }
 0x3a5   :  { %1104 = vst.msk [vmem:[#allocation2] sm:$0xff] %vm332_vm1, %v1102_v0  ;;  %v1103_v8 = vadd.f32 %v990_v7, %v900_v4  ;;  %v1385_v28 = vpop.f32.mrb[19].mxu0  ;;  %v1405_v29 = vpop.f32.mrb[23].mxu1 }
 0x3a7   :  { %1105 = vst.msk [vmem:[#allocation2 + $0x8] sm:$0xff] %vm332_vm1, %v1103_v8 }
 0x3a8   :  { %1475 = shalt.err (!%p1472_p4)
}
 0x3a9   :  { %s1476_s21 = scalar_lea.hbm %s1975_s12, 256 }
 0x3aa   :  { %p1477_p5 = scmp.ne.s32.totalorder %s1975_s12, %s1476_s21  ;;  %p1480_p6 = scmp.lt.u32.totalorder %s1476_s21, %s1975_s12 }
 0x3ac   :  { %p1482_p7 = pnand %p1480_p6, %p1477_p5 }
 0x3ae   :  { %1485 = shalt.err (!%p1482_p7)
}
 0x3af   :  { %s1515_s25 = smov 128   ;;  %s1516_s10 = smov 8  }
 0x3b0   :  { %1123 = dma.vmem_to_hbm [thread:$0]  %s1118_s9, 256, %s1975_s12, [#allocation3], %s1515_s25, %s1515_s25, %s1516_s10  }
 0x3b1   :  { %s1517_s27 = smov [#allocation4]  }
 0x3b2   :  { %s1129_s28 = sshll.u32 %s1517_s27, 4  ;;  %s1130_s28 = int_to_ptr.vmem [resolvable:$true] %s1129_s28 }
 0x3b3   :  { %s1486_s29 = scalar_lea.vmem %s1130_s28, 256  ;;  %p1491_p9 = scmp.lt.s32.totalorder %s1130_s28, %s1130_s28 }
 0x3b4   :  { %p1487_p8 = scmp.ne.s32.totalorder %s1130_s28, %s1486_s29  ;;  %p1492_p10 = scmp.lt.s32.totalorder %s1486_s29, %s1486_s29 }
 0x3b6   :  { %p1493_p11 = por %p1492_p10, %p1491_p9 }
 0x3b8   :  { %p1494_p12 = pnand %p1493_p11, %p1487_p8 }
 0x3c2   :  { %v1095_v26 = vpop.f32.mrb[20].mxu0 }
 0x3c3   :  { %v1106_v30 = vsub.f32 %v1095_v26, %v897_v59  ;;  %v1424_v31 = vpop.f32.mrb[21].mxu0 }
 0x3c4   :  { %v1098_v32 = vpop.f32.mrb[22].mxu0 }
 0x3c5   :  { %v1108_v33 = vadd.f32 %v1106_v30, %v987_v62  ;;  %v1107_v34 = vsub.f32 %v1098_v32, %v900_v4  ;;  %v1425_v27 = vpop.f32.mrb[23].mxu0 }
 0x3c7   :  { %1110 = vst.msk [vmem:[#allocation4] sm:$0xff] %vm332_vm1, %v1108_v33  ;;  %v1109_v35 = vadd.f32 %v1107_v34, %v990_v7 }
 0x3c9   :  { %1111 = vst.msk [vmem:[#allocation4 + $0x8] sm:$0xff] %vm332_vm1, %v1109_v35 }
 0x3ca   :  { %1497 = shalt.err (!%p1494_p12)
}
 0x3cb   :  { %s1498_s4 = scalar_lea.hbm %s1976_s13, 256 }
 0x3cc   :  { %p1499_p13 = scmp.ne.s32.totalorder %s1976_s13, %s1498_s4  ;;  %p1502_p0 = scmp.lt.u32.totalorder %s1498_s4, %s1976_s13 }
 0x3ce   :  { %p1504_p1 = pnand %p1502_p0, %p1499_p13 }
 0x3d0   :  { %1507 = shalt.err (!%p1504_p1)
}
 0x3d1   :  { %1135 = dma.vmem_to_hbm [thread:$0]  %s1130_s28, 256, %s1976_s13, [#allocation5], %s1515_s25, %s1515_s25, %s1516_s10  }
 0x3d2   :  { %1508 = dma.done.wait [#allocation3], 256  }
 0x3d3   :  { %1509 = vsyncadd [#allocation3], 4294967040 }
 0x3d4   :  { %1510 = dma.done.wait [#allocation5], 256  }
 0x3d5   :  { %1511 = vsyncadd [#allocation5], 4294967040 }
 0x3d6   :  { %1142 = vsyncpa [#allocation3], 1 }
 0x3d7   :  { %1143 = vsyncpa [#allocation5], 1 }

</bundles_post_ra>
